<compile_context>
chip_gen: v7x
topology: tpu7x:2x2x1
jax: 0.10.0
libtpu: 0.0.40
codegen_flags: <defaults>
</compile_context>

<pallas_src>
from functools import partial

import jax
import jax.numpy as jnp
from jax.experimental import pallas as pl
from jax.experimental.pallas import tpu as pltpu


def mlp_kernel(x_ref, w1_ref, b1_ref, w2_ref, b2_ref, w3_ref, b3_ref, o_ref):
    # x_ref : (8, TB)    feature-major, batch on lanes
    # w1_ref: (64, 8)    b1_ref: (64, 1)
    # w2_ref: (32, 64)   b2_ref: (32, 1)
    # w3_ref: (1, 32)    b3_ref: (1, 1)
    # o_ref : (1, TB)    lane-dense output tile
    x = x_ref[...]

    # Layer 1: (64,8) @ (8,TB) + (64,1) -> ReLU
    h1 = jnp.dot(w1_ref[...], x, preferred_element_type=jnp.float32)
    h1 = jnp.maximum(h1 + b1_ref[...], 0.0)

    # Layer 2: (32,64) @ (64,TB) + (32,1) -> ReLU
    h2 = jnp.dot(w2_ref[...], h1, preferred_element_type=jnp.float32)
    h2 = jnp.maximum(h2 + b2_ref[...], 0.0)

    # Layer 3: (1,32) @ (32,TB) + (1,1)
    out = jnp.dot(w3_ref[...], h2, preferred_element_type=jnp.float32)
    o_ref[...] = out + b3_ref[...]


@partial(jax.jit, static_argnames=("tb",))
def mlp_forward(x, w1, b1, w2, b2, w3, b3, *, tb=8192):
    """x: (B, 8); weights stored as (in, out) like x @ W + b. Returns (B, 1)."""
    B, F = x.shape
    assert F == 8

    # Pad batch to a multiple of 128 lanes, pick tile, round pad up to tile.
    b_pad = ((B + 127) // 128) * 128
    tb = min(tb, b_pad)
    b_pad = ((b_pad + tb - 1) // tb) * tb

    # Wrapper-side layout plumbing: feature-major input, transposed weights,
    # column-vector biases (broadcast along lanes inside the kernel).
    xT = jnp.zeros((8, b_pad), jnp.float32).at[:, :B].set(x.T)
    w1T, w2T, w3T = w1.T, w2.T, w3.T                    # (64,8) (32,64) (1,32)
    b1T = b1.reshape(64, 1)
    b2T = b2.reshape(32, 1)
    b3T = b3.reshape(1, 1)

    const = lambda shape: pl.BlockSpec(shape, lambda i: (0, 0))

    out_t = pl.pallas_call(
        mlp_kernel,
        out_shape=jax.ShapeDtypeStruct((1, b_pad), jnp.float32),
        grid=(b_pad // tb,),
        in_specs=[
            pl.BlockSpec((8, tb), lambda i: (0, i)),    # streamed batch tile
            const((64, 8)), const((64, 1)),             # weights/biases resident
            const((32, 64)), const((32, 1)),
            const((1, 32)), const((1, 1)),
        ],
        out_specs=pl.BlockSpec((1, tb), lambda i: (0, i)),
        compiler_params=pltpu.CompilerParams(
            dimension_semantics=("parallel",)),
    )(xT, w1T, b1T, w2T, b2T, w3T, b3T)

    # Back to PyTorch layout: (B, 1)
    return out_t[:, :B].T


def init_params(key):
    # PyTorch nn.Linear default init: U(-1/sqrt(fan_in), 1/sqrt(fan_in))
    def linear(k, fan_in, fan_out):
        kw, kb = jax.random.split(k)
        bound = 1.0 / jnp.sqrt(fan_in)
        w = jax.random.uniform(kw, (fan_in, fan_out), jnp.float32, -bound, bound)
        b = jax.random.uniform(kb, (1, fan_out), jnp.float32, -bound, bound)
        return w, b

    k1, k2, k3 = jax.random.split(key, 3)
    w1, b1 = linear(k1, 8, 64)
    w2, b2 = linear(k2, 64, 32)
    w3, b3 = linear(k3, 32, 1)
    return w1, b1, w2, b2, w3, b3


def _ref(x, w1, b1, w2, b2, w3, b3):
    h1 = jnp.maximum(x @ w1 + b1, 0.0)
    h2 = jnp.maximum(h1 @ w2 + b2, 0.0)
    return h2 @ w3 + b3


if __name__ == "__main__":
    key = jax.random.PRNGKey(0)
    kx, kx2, kp = jax.random.split(key, 3)
    w1, b1, w2, b2, w3, b3 = init_params(kp)

    # Small primary case (B=8): pads to one 128-lane tile.
    B = 8
    x = jax.random.normal(kx, (B, 8), jnp.float32)
    out = jax.block_until_ready(mlp_forward(x, w1, b1, w2, b2, w3, b3))
    ref = _ref(x, w1, b1, w2, b2, w3, b3)
    assert out.shape == (B, 1)
    assert bool(jnp.allclose(out, ref, atol=1e-5, rtol=1e-5))

    # Padding / non-multiple-of-128 batch sanity check.
    B2 = 200
    x2 = jax.random.normal(kx2, (B2, 8), jnp.float32)
    out2 = jax.block_until_ready(mlp_forward(x2, w1, b1, w2, b2, w3, b3))
    ref2 = _ref(x2, w1, b1, w2, b2, w3, b3)
    assert out2.shape == (B2, 1)
    assert bool(jnp.allclose(out2, ref2, atol=1e-5, rtol=1e-5))

    print("KERNEL_OK")
</pallas_src>

<mosaic_0001>
module attributes {stable_mosaic.version = 11 : i64} {
  func.func @mlp_kernel(%arg0: i32, %arg1: memref<8x128xf32, #tpu.memory_space<vmem>>, %arg2: memref<64x8xf32, #tpu.memory_space<vmem>>, %arg3: memref<64x1xf32, #tpu.memory_space<vmem>>, %arg4: memref<32x64xf32, #tpu.memory_space<vmem>>, %arg5: memref<32x1xf32, #tpu.memory_space<vmem>>, %arg6: memref<1x32xf32, #tpu.memory_space<vmem>>, %arg7: memref<1x1xf32, #tpu.memory_space<vmem>>, %arg8: memref<1x128xf32, #tpu.memory_space<vmem>>) attributes {dimension_semantics = [#tpu.dimension_semantics<parallel>], iteration_bounds = array<i64: 1>, scalar_prefetch = 0 : i64, scratch_operands = 0 : i64, tpu.core_type = #tpu.core_type<tc>, window_params = [{transform_indices = @transform_0, window_bounds = array<i64: 8, 128>}, {pipeline_mode = #tpu.pipeline_mode<synchronous>, transform_indices = @transform_1, window_bounds = array<i64: 64, 8>}, {pipeline_mode = #tpu.pipeline_mode<synchronous>, transform_indices = @transform_2, window_bounds = array<i64: 64, 1>}, {pipeline_mode = #tpu.pipeline_mode<synchronous>, transform_indices = @transform_3, window_bounds = array<i64: 32, 64>}, {pipeline_mode = #tpu.pipeline_mode<synchronous>, transform_indices = @transform_4, window_bounds = array<i64: 32, 1>}, {pipeline_mode = #tpu.pipeline_mode<synchronous>, transform_indices = @transform_5, window_bounds = array<i64: 1, 32>}, {pipeline_mode = #tpu.pipeline_mode<synchronous>, transform_indices = @transform_6, window_bounds = array<i64: 1, 1>}, {transform_indices = @transform_7, window_bounds = array<i64: 1, 128>}]} {
    %c0 = arith.constant 0 : index
    %c0_0 = arith.constant 0 : index
    %0 = vector.load %arg1[%c0, %c0_0] : memref<8x128xf32, #tpu.memory_space<vmem>>, vector<8x128xf32>
    %c0_1 = arith.constant 0 : index
    %c0_2 = arith.constant 0 : index
    %1 = vector.load %arg2[%c0_1, %c0_2] : memref<64x8xf32, #tpu.memory_space<vmem>>, vector<64x8xf32>
    %cst = arith.constant dense<0.000000e+00> : vector<64x128xf32>
    %2 = tpu.matmul %1, %0, %cst {dimension_numbers = #tpu.dot_dimension_numbers<[1], [0], [0], [1], [0, 0, 1, 1], [], []>} : vector<64x8xf32>, vector<8x128xf32>, vector<64x128xf32> -> vector<64x128xf32>
    %c0_3 = arith.constant 0 : index
    %c0_4 = arith.constant 0 : index
    %3 = vector.load %arg3[%c0_3, %c0_4] : memref<64x1xf32, #tpu.memory_space<vmem>>, vector<64x1xf32>
    %4 = vector.broadcast %3 : vector<64x1xf32> to vector<64x128xf32>
    %5 = arith.addf %2, %4 : vector<64x128xf32>
    %cst_5 = arith.constant 0.000000e+00 : f32
    %6 = vector.broadcast %cst_5 : f32 to vector<64x128xf32>
    %7 = arith.maximumf %5, %6 : vector<64x128xf32>
    %c0_6 = arith.constant 0 : index
    %c0_7 = arith.constant 0 : index
    %8 = vector.load %arg4[%c0_6, %c0_7] : memref<32x64xf32, #tpu.memory_space<vmem>>, vector<32x64xf32>
    %cst_8 = arith.constant dense<0.000000e+00> : vector<32x128xf32>
    %9 = tpu.matmul %8, %7, %cst_8 {dimension_numbers = #tpu.dot_dimension_numbers<[1], [0], [0], [1], [0, 0, 1, 1], [], []>} : vector<32x64xf32>, vector<64x128xf32>, vector<32x128xf32> -> vector<32x128xf32>
    %c0_9 = arith.constant 0 : index
    %c0_10 = arith.constant 0 : index
    %10 = vector.load %arg5[%c0_9, %c0_10] : memref<32x1xf32, #tpu.memory_space<vmem>>, vector<32x1xf32>
    %11 = vector.broadcast %10 : vector<32x1xf32> to vector<32x128xf32>
    %12 = arith.addf %9, %11 : vector<32x128xf32>
    %cst_11 = arith.constant 0.000000e+00 : f32
    %13 = vector.broadcast %cst_11 : f32 to vector<32x128xf32>
    %14 = arith.maximumf %12, %13 : vector<32x128xf32>
    %c0_12 = arith.constant 0 : index
    %c0_13 = arith.constant 0 : index
    %15 = vector.load %arg6[%c0_12, %c0_13] : memref<1x32xf32, #tpu.memory_space<vmem>>, vector<1x32xf32>
    %cst_14 = arith.constant dense<0.000000e+00> : vector<1x128xf32>
    %16 = tpu.matmul %15, %14, %cst_14 {dimension_numbers = #tpu.dot_dimension_numbers<[1], [0], [0], [1], [0, 0, 1, 1], [], []>} : vector<1x32xf32>, vector<32x128xf32>, vector<1x128xf32> -> vector<1x128xf32>
    %c0_15 = arith.constant 0 : index
    %c0_16 = arith.constant 0 : index
    %17 = vector.load %arg7[%c0_15, %c0_16] : memref<1x1xf32, #tpu.memory_space<vmem>>, vector<1x1xf32>
    %18 = vector.broadcast %17 : vector<1x1xf32> to vector<1x128xf32>
    %19 = arith.addf %16, %18 : vector<1x128xf32>
    %c0_17 = arith.constant 0 : index
    %c0_18 = arith.constant 0 : index
    %20 = vector.load %arg8[%c0_17, %c0_18] : memref<1x128xf32, #tpu.memory_space<vmem>>, vector<1x128xf32>
    tpu.vector_store %arg8[%c0_17, %c0_18], %19 {strides = array<i32>} : memref<1x128xf32, #tpu.memory_space<vmem>>, vector<1x128xf32>,
    return
  }
  func.func @transform_0(%arg0: i32) -> (i32, i32) {
    %c0_i32 = arith.constant 0 : i32
    %c0_i32_0 = arith.constant 0 : i32
    return %c0_i32, %arg0 : i32, i32
  }
  func.func @transform_1(%arg0: i32) -> (i32, i32) {
    %c0_i32 = arith.constant 0 : i32
    %c0_i32_0 = arith.constant 0 : i32
    %c0_i32_1 = arith.constant 0 : i32
    return %c0_i32, %c0_i32_0 : i32, i32
  }
  func.func @transform_2(%arg0: i32) -> (i32, i32) {
    %c0_i32 = arith.constant 0 : i32
    %c0_i32_0 = arith.constant 0 : i32
    %c0_i32_1 = arith.constant 0 : i32
    return %c0_i32, %c0_i32_0 : i32, i32
  }
  func.func @transform_3(%arg0: i32) -> (i32, i32) {
    %c0_i32 = arith.constant 0 : i32
    %c0_i32_0 = arith.constant 0 : i32
    %c0_i32_1 = arith.constant 0 : i32
    return %c0_i32, %c0_i32_0 : i32, i32
  }
  func.func @transform_4(%arg0: i32) -> (i32, i32) {
    %c0_i32 = arith.constant 0 : i32
    %c0_i32_0 = arith.constant 0 : i32
    %c0_i32_1 = arith.constant 0 : i32
    return %c0_i32, %c0_i32_0 : i32, i32
  }
  func.func @transform_5(%arg0: i32) -> (i32, i32) {
    %c0_i32 = arith.constant 0 : i32
    %c0_i32_0 = arith.constant 0 : i32
    %c0_i32_1 = arith.constant 0 : i32
    return %c0_i32, %c0_i32_0 : i32, i32
  }
  func.func @transform_6(%arg0: i32) -> (i32, i32) {
    %c0_i32 = arith.constant 0 : i32
    %c0_i32_0 = arith.constant 0 : i32
    %c0_i32_1 = arith.constant 0 : i32
    return %c0_i32, %c0_i32_0 : i32, i32
  }
  func.func @transform_7(%arg0: i32) -> (i32, i32) {
    %c0_i32 = arith.constant 0 : i32
    %c0_i32_0 = arith.constant 0 : i32
    return %c0_i32, %arg0 : i32, i32
  }
}

</mosaic_0001>

<bundles_post_ra>
// kernel: mlp_forward.1
= control target key start
LH: loop header
LB: loop body
LE: loop exit
PB: predicated region body
PF: predicated region fallthrough
CT: control target
= control target key end

     0   :  { %vm85_vm0 = vcmask 64512   ;;  %v557_v3 = vmov 0   ;;  %vm251_vm1 = vcmask 523264   ;;  %vm559_vm2 = vmmov 0   ;;  %s697_s0 = inlined_call_operand.vmem [shape: f32[8,128], index: 0, kind: input, shape index: {}]   ;;  %s698_s1 = inlined_call_operand.vmem [shape: f32[64,8], index: 1, kind: input, shape index: {}]   ;;  %s699_s6 = inlined_call_operand.<no memory space> [shape: f32[1,1], index: 6, kind: input, shape index: {}]   ;;  %s700_s2 = inlined_call_operand.vmem [shape: f32[64,1], index: 2, kind: input, shape index: {}]   ;;  %s701_s4 = inlined_call_operand.vmem [shape: f32[32,1], index: 4, kind: input, shape index: {}]   ;;  %s702_s3 = inlined_call_operand.vmem [shape: f32[32,64], index: 3, kind: input, shape index: {}]   ;;  %s703_s5 = inlined_call_operand.vmem [shape: f32[1,32], index: 5, kind: input, shape index: {}]   ;;  %s704_s7 = inlined_call_operand.vmem [shape: f32[1,128], index: 7, kind: output, shape index: {}]  }
   0x1   :  { %v28_v0 = vld [vmem:[%s697_s0] sm:$0xff]  ;;  %v30_v2 = vld [vmem:[%s698_s1 + $0x8] sm:$0xff]  ;;  %555 = vset.pattern.permute.xlu0 %v557_v3  ;;  %556 = vset.pattern.permute.xlu1 %v557_v3  ;;  %v12_v4 = vstv %s699_s6  ;;  %v31_v5 = vld [vmem:[%s698_s1 + $0x10] sm:$0xff]  ;;  %vm364_vm3 = vcmask 261120  }
   0x2   :  { %v29_v1 = vld [vmem:[%s698_s1] sm:$0xff]  ;;  %482 = vmatprep.subr.mxu0 %v28_v0  ;;  %13 = vst [vmem:[#allocation2] sm:$0x1] %v12_v4  ;;  %v39_v7 = vld [vmem:[%s700_s2 + $0x10] sm:$0xff]  ;;  %v32_v8 = vld [vmem:[%s698_s1 + $0x18] sm:$0xff] }
   0x3   :  { %484 = vmatprep.mubr.msk.f32.mxu0 %vm85_vm0, %v29_v1  ;;  %483 = vmatpush3.msra.mxu0 %v28_v0  ;;  %v37_v6 = vld [vmem:[%s700_s2] sm:$0xff]  ;;  %v38_v10 = vld [vmem:[%s700_s2 + $0x8] sm:$0xff]  ;;  %v40_v11 = vld [vmem:[%s700_s2 + $0x18] sm:$0xff]  ;;  %v558_v0 = vmov 0.0|0.0   ;;  %v560_v1 = vmov 0.0  }
   0x4   :  { %485 = vmatmul.mubr.msk.f32.vlgmr.msra.gmra.mrb[0].mxu0 %vm85_vm0, %v30_v2  ;;  %47 = vperm.xlu0 %555, %v37_v6   ;;  %v33_v9 = vld [vmem:[%s698_s1 + $0x20] sm:$0xff]  ;;  %v34_v12 = vld [vmem:[%s698_s1 + $0x28] sm:$0xff]  ;;  %v35_v13 = vld [vmem:[%s698_s1 + $0x30] sm:$0xff] }
   0x5   :  { %487 = vmatprep.mubr.msk.f32.mxu0 %vm85_vm0, %v31_v5  ;;  %57 = vperm.xlu1 %556, %v39_v7   ;;  %v41_v14 = vld [vmem:[%s700_s2 + $0x20] sm:$0xff]  ;;  %v42_v15 = vld [vmem:[%s700_s2 + $0x28] sm:$0xff]  ;;  %v36_v16 = vld [vmem:[%s698_s1 + $0x38] sm:$0xff] }
   0x6   :  { %v43_v17 = vld [vmem:[%s700_s2 + $0x30] sm:$0xff]  ;;  %v44_v18 = vld [vmem:[%s700_s2 + $0x38] sm:$0xff]  ;;  %v227_v19 = vld [vmem:[%s701_s4] sm:$0xff]  ;;  %545 = vmatprep.subr.bf16.mxu0 %v558_v0 }
   0x7   :  { %v228_v20 = vld [vmem:[%s701_s4 + $0x8] sm:$0xff]  ;;  %v229_v21 = vld [vmem:[%s701_s4 + $0x10] sm:$0xff]  ;;  %v230_v22 = vld [vmem:[%s701_s4 + $0x18] sm:$0xff] }
   0x8   :  { %488 = vmatmul.mubr.msk.f32.gmra.mrb[2].mxu0 %vm85_vm0, %v32_v8  ;;  %52 = vperm.xlu0 %555, %v38_v10   ;;  %v223_v24 = vld [vmem:[%s702_s3] sm:$0xff]  ;;  %v224_v61 = vld [vmem:[%s702_s3 + $0x8] sm:$0xff]  ;;  %v225_v62 = vld [vmem:[%s702_s3 + $0x10] sm:$0xff] }
   0x9   :  { %490 = vmatprep.mubr.msk.f32.mxu0 %vm85_vm0, %v33_v9  ;;  %62 = vperm.xlu1 %556, %v40_v11   ;;  %v354_v23 = vld [vmem:[#allocation2] sm:$0x1]  ;;  %v226_v63 = vld [vmem:[%s702_s3 + $0x18] sm:$0xff] }
   0xa   :  { %512 = vmatprep.mubr.msk.f32.mxu1 %vm251_vm1, %v223_v24 }
   0xc   :  { %491 = vmatmul.mubr.msk.f32.gmra.mrb[4].mxu0 %vm85_vm0, %v34_v12  ;;  %67 = vperm.xlu0 %555, %v41_v14  }
   0xd   :  { %493 = vmatprep.mubr.msk.f32.mxu0 %vm85_vm0, %v35_v13  ;;  %72 = vperm.xlu1 %556, %v42_v15  }
  0x10   :  { %494 = vmatmul.mubr.msk.f32.gmra.mrb[6].mxu0 %vm85_vm0, %v36_v16  ;;  %77 = vperm.xlu0 %555, %v43_v17  }
  0x11   :  { %82 = vperm.xlu1 %556, %v44_v18   ;;  %526 = vmatprep.mubr.msk.f32.mxu0 %vm559_vm2, %v560_v1 }
  0x14   :  { %233 = vperm.xlu0 %555, %v227_v19  }
  0x15   :  { %238 = vperm.xlu1 %556, %v228_v20   ;;  %v353_v20 = vld [vmem:[%s703_s5] sm:$0x1] }
  0x18   :  { %243 = vperm.xlu0 %555, %v229_v21   ;;  %v360_v21 = vlaneseq }
  0x19   :  { %248 = vperm.xlu1 %556, %v230_v22  }
  0x1a   :  { %v361_v22 = vshrl.u32 %v360_v21, 7 }
  0x1c   :  { %357 = vperm.xlu0 %555, %v354_v23   ;;  %v362_v23 = vsub.s32 0, %v361_v22 }
  0x83   :  { %v48_v25 = vpop.permute.xlu0 %47 }
  0x84   :  { %v58_v26 = vpop.permute.xlu1 %57 }
  0x87   :  { %v53_v27 = vpop.permute.xlu0 %52 }
  0x88   :  { %v63_v28 = vpop.permute.xlu1 %62 }
  0x8b   :  { %v68_v41 = vpop.permute.xlu0 %67 }
  0x8c   :  { %v73_v38 = vpop.permute.xlu1 %72 }
  0x8f   :  { %v78_v53 = vpop.permute.xlu0 %77 }
  0x90   :  { %v83_v50 = vpop.permute.xlu1 %82 }
  0x93   :  { %v234_v3 = vpop.permute.xlu0 %233 }
  0x94   :  { %v239_v2 = vpop.permute.xlu1 %238 }
  0x97   :  { %v244_v12 = vpop.permute.xlu0 %243 }
  0x98   :  { %v249_v9 = vpop.permute.xlu1 %248 }
  0x9b   :  { %v358_v24 = vpop.permute.xlu0 %357 }
  0xd7   :  { %v486_v29 = vpop.f32.mrb[0].mxu0 }
  0xd8   :  { %v182_v30 = vadd.f32 %v486_v29, %v53_v27  ;;  %v176_v31 = vpop.f32.mrb[1].mxu0 }
  0xd9   :  { %v177_v32 = vadd.f32 %v176_v31, %v48_v25  ;;  %v363_v25 = vrot.slane %v358_v24, %v362_v23 }
  0xda   :  { %v216_v33 = vmax.f32 %v182_v30, 0.0 }
  0xdb   :  { %v215_v34 = vmax.f32 %v177_v32, 0.0  ;;  %v489_v35 = vpop.f32.mrb[2].mxu0 }
  0xdc   :  { %v192_v36 = vadd.f32 %v489_v35, %v63_v28  ;;  %v186_v37 = vpop.f32.mrb[3].mxu0 }
  0xdd   :  { %v187_v39 = vadd.f32 %v186_v37, %v58_v26  ;;  %v529_v40 = vpack.c.bf16 %v216_v33, %v215_v34 }
  0xde   :  { %v218_v42 = vmax.f32 %v192_v36, 0.0 }
  0xdf   :  { %v217_v43 = vmax.f32 %v187_v39, 0.0  ;;  %v492_v44 = vpop.f32.mrb[4].mxu0  ;;  %530 = vmatprep.subr.bf16.mxu1 %v529_v40 }
  0xe0   :  { %v202_v45 = vadd.f32 %v492_v44, %v73_v38  ;;  %v196_v46 = vpop.f32.mrb[5].mxu0  ;;  %532 = vmatpush3.bf16.msra.mxu1 %v529_v40 }
  0xe1   :  { %v533_v47 = vpack.c.bf16 %v218_v42, %v217_v43  ;;  %v197_v48 = vadd.f32 %v196_v46, %v68_v41 }
  0xe2   :  { %v220_v49 = vmax.f32 %v202_v45, 0.0 }
  0xe3   :  { %v219_v51 = vmax.f32 %v197_v48, 0.0  ;;  %v495_v52 = vpop.f32.mrb[6].mxu0  ;;  %534 = vmatprep.subr.bf16.mxu1 %v533_v47 }
  0xe4   :  { %v212_v54 = vadd.f32 %v495_v52, %v83_v50  ;;  %v206_v55 = vpop.f32.mrb[7].mxu0  ;;  %536 = vmatpush3.bf16.msra.mxu1 %v533_v47 }
  0xe5   :  { %v537_v56 = vpack.c.bf16 %v220_v49, %v219_v51  ;;  %v207_v57 = vadd.f32 %v206_v55, %v78_v53 }
  0xe6   :  { %v222_v58 = vmax.f32 %v212_v54, 0.0 }
  0xe7   :  { %v221_v59 = vmax.f32 %v207_v57, 0.0  ;;  %538 = vmatprep.subr.bf16.mxu1 %v537_v56 }
  0xe8   :  { %540 = vmatpush3.bf16.msra.mxu1 %v537_v56 }
  0xe9   :  { %v541_v60 = vpack.c.bf16 %v222_v58, %v221_v59 }
  0xeb   :  { %542 = vmatprep.subr.bf16.mxu1 %v541_v60 }
  0xec   :  { %544 = vmatpush3.bf16.msra.mxu1 %v541_v60 }
  0xef   :  { %513 = vmatmul.mubr.msk.f32.vlgmr.msra.gmra.mrb[0].mxu1 %vm251_vm1, %v224_v61 }
  0xf0   :  { %515 = vmatprep.mubr.msk.f32.mxu1 %vm251_vm1, %v225_v62 }
  0xf3   :  { %516 = vmatmul.mubr.msk.f32.gmra.mrb[2].mxu1 %vm251_vm1, %v226_v63 }
 0x1c2   :  { %v514_v4 = vpop.f32.mrb[0].mxu1 }
 0x1c3   :  { %v336_v5 = vadd.f32 %v514_v4, %v239_v2  ;;  %v330_v6 = vpop.f32.mrb[1].mxu1 }
 0x1c4   :  { %v331_v7 = vadd.f32 %v330_v6, %v234_v3 }
 0x1c5   :  { %v350_v8 = vmax.f32 %v336_v5, 0.0 }
 0x1c6   :  { %v349_v10 = vmax.f32 %v331_v7, 0.0  ;;  %v517_v11 = vpop.f32.mrb[2].mxu1 }
 0x1c7   :  { %v346_v13 = vadd.f32 %v517_v11, %v249_v9  ;;  %v340_v14 = vpop.f32.mrb[3].mxu1 }
 0x1c8   :  { %v546_v15 = vpack.c.bf16 %v350_v8, %v349_v10  ;;  %v341_v16 = vadd.f32 %v340_v14, %v244_v12 }
 0x1c9   :  { %v352_v17 = vmax.f32 %v346_v13, 0.0 }
 0x1ca   :  { %v351_v18 = vmax.f32 %v341_v16, 0.0  ;;  %547 = vmatpush3.bf16.msra.mxu0 %v546_v15 }
 0x1cb   :  { %548 = vmatprep.subr.bf16.mxu0 %v558_v0 }
 0x1cc   :  { %v549_v19 = vpack.c.bf16 %v352_v17, %v351_v18 }
 0x1ce   :  { %550 = vmatpush3.bf16.msra.mxu0 %v549_v19 }
 0x1d1   :  { %527 = vmatmul.mubr.msk.f32.vlgmr.msra.gmra.mrb[8].mxu0 %vm364_vm3, %v353_v20 }
 0x2a4   :  { %v434_v26 = vpop.f32.mrb[8].mxu0 }
 0x2a5   :  { %v435_v27 = vadd.f32 %v434_v26, %v363_v25  ;;  %v528_v28 = vpop.f32.mrb[9].mxu0 }
 0x2a7   :  { %438 = vst [vmem:[%s704_s7] sm:$0x1] %v435_v27 }

</bundles_post_ra>
